<compile_context>
chip_gen: v5e
topology: v5e:2x2
jax: 0.10.0
libtpu: 0.0.40
codegen_flags: <defaults>
</compile_context>

<pallas_src>
import functools

import jax
import jax.numpy as jnp
from jax.experimental import pallas as pl
from jax.experimental.pallas import tpu as pltpu

_LANES = 128
_SUBLANES = 8
_CLIP_LO = 1e-4
_CLIP_HI = 1.0 - 1e-4


def _round_up(x: int, m: int) -> int:
    return ((x + m - 1) // m) * m


def _nsnll_kernel(flat_ref, p0_ref, out_ref, acc_ref, *, total_elems, n_valid):
    """flat_ref: (tile_rows, 128) slab of all probabilities (padded, masked).
    p0_ref:   (rows0, 128) slab of column-0 probabilities (padded, masked).
    out_ref:  (1, 1) f32 scalar output in SMEM.
    acc_ref:  (tile_rows, 128) f32 VMEM accumulator (persists across grid)."""
    i = pl.program_id(0)
    n_steps = pl.num_programs(0)
    tile_rows, lanes = acc_ref.shape

    @pl.when(i == 0)
    def _init():
        acc_ref[...] = jnp.zeros_like(acc_ref)
        out_ref[0, 0] = jnp.float32(0.0)

    p = jnp.clip(flat_ref[...].astype(jnp.float32), _CLIP_LO, _CLIP_HI)
    contrib = jnp.log(1.0 - p)  # single EUP log per element

    # Mask out padded elements (only the last tile actually has any; the
    # iota/compare/select is cheap VPU filler next to the EUP logs).
    row = jax.lax.broadcasted_iota(jnp.int32, p.shape, 0)
    lane = jax.lax.broadcasted_iota(jnp.int32, p.shape, 1)
    gidx = (i * tile_rows + row) * lanes + lane
    contrib = jnp.where(gidx < total_elems, contrib, 0.0)

    # Element-wise accumulate (pure VPU) -- no per-step scalar reduction.
    acc_ref[...] += contrib

    @pl.when(i == n_steps - 1)
    def _finalize():
        # Column-0 correction:  sum_i [ log(p_i0) - log(1 - p_i0) ]
        q = jnp.clip(p0_ref[...].astype(jnp.float32), _CLIP_LO, _CLIP_HI)
        r0 = jax.lax.broadcasted_iota(jnp.int32, q.shape, 0)
        l0 = jax.lax.broadcasted_iota(jnp.int32, q.shape, 1)
        idx0 = r0 * q.shape[1] + l0
        corr = jnp.where(idx0 < n_valid, jnp.log(q) - jnp.log(1.0 - q), 0.0)
        # Single cross-lane/sublane reduction + single scalar store.
        out_ref[0, 0] = -(jnp.sum(acc_ref[...]) + jnp.sum(corr))


def nsnll_loss(probs: jax.Array,
               *,
               max_tile_rows: int = 2048,
               vmem_limit_bytes: int = 32 * 1024 * 1024) -> jax.Array:
    """Pallas implementation of NSNLLLoss.forward(probs) for 2-D probs (N, C)."""
    assert probs.ndim == 2, "NSNLLLoss expects a 2-D (N, C) probability matrix"
    n, c = probs.shape
    total = n * c

    # ---- lane-dense main slab: all N*C probabilities on 128 lanes ----------
    rows_min = pl.cdiv(total, _LANES)
    if rows_min <= max_tile_rows:
        # Single block covering the full (possibly ragged-row) slab; a block
        # equal to the full array dims is exempt from the (8,128) rule.
        n_tiles = 1
        tile_rows = rows_min
    else:
        n_tiles = pl.cdiv(rows_min, max_tile_rows)
        tile_rows = _round_up(pl.cdiv(rows_min, n_tiles), _SUBLANES)
    rows = n_tiles * tile_rows

    flat = probs.reshape(-1)
    pad = rows * _LANES - total
    if pad:
        flat = jnp.pad(flat, (0, pad), constant_values=0.5)
    flat = flat.reshape(rows, _LANES)

    # ---- lane-dense column-0 slab for the correction term ------------------
    rows0 = pl.cdiv(n, _LANES)
    p0 = probs[:, 0]
    pad0 = rows0 * _LANES - n
    if pad0:
        p0 = jnp.pad(p0, (0, pad0), constant_values=0.5)
    p0 = p0.reshape(rows0, _LANES)

    kernel = functools.partial(_nsnll_kernel, total_elems=total, n_valid=n)

    out = pl.pallas_call(
        kernel,
        out_shape=jax.ShapeDtypeStruct((1, 1), jnp.float32),
        grid_spec=pltpu.PrefetchScalarGridSpec(
            num_scalar_prefetch=0,
            grid=(n_tiles,),
            in_specs=[
                pl.BlockSpec((tile_rows, _LANES), lambda i: (i, 0)),
                # constant block index -> fetched once, stays resident in VMEM
                pl.BlockSpec((rows0, _LANES), lambda i: (0, 0)),
            ],
            out_specs=pl.BlockSpec(memory_space=pltpu.SMEM),
            scratch_shapes=[pltpu.VMEM((tile_rows, _LANES), jnp.float32)],
        ),
        compiler_params=pltpu.CompilerParams(
            # accumulator carried across the single grid axis -> "arbitrary"
            dimension_semantics=("arbitrary",),
            vmem_limit_bytes=vmem_limit_bytes,
        ),
    )(flat, p0)
    return out[0, 0]


def _reference(probs: jax.Array) -> jax.Array:
    p = jnp.clip(probs.astype(jnp.float32), _CLIP_LO, _CLIP_HI)
    loss = jnp.sum(jnp.log(p[:, 0])) + jnp.sum(jnp.log(1.0 - p[:, 1:]))
    return -loss


if __name__ == "__main__":
    key = jax.random.PRNGKey(0)
    N, C = 32, 8  # small synthetic shape: 32 samples, 8 probability columns
    probs = jax.random.uniform(key, (N, C), dtype=jnp.float32,
                               minval=0.0, maxval=1.0)

    loss = nsnll_loss(probs)
    jax.block_until_ready(loss)

    ref = _reference(probs)
    assert jnp.allclose(loss, ref, rtol=1e-4, atol=1e-4), (loss, ref)

    print("KERNEL_OK")
</pallas_src>

<mosaic_0001>
module attributes {stable_mosaic.version = 11 : i64} {
  func.func @_nsnll_kernel(%arg0: i32, %arg1: memref<2x128xf32, #tpu.memory_space<vmem>>, %arg2: memref<1x128xf32, #tpu.memory_space<vmem>>, %arg3: memref<1x1xf32, #tpu.memory_space<smem>>, %arg4: memref<2x128xf32, #tpu.memory_space<vmem>>) attributes {dimension_semantics = [#tpu.dimension_semantics<arbitrary>], iteration_bounds = array<i64: 1>, scalar_prefetch = 0 : i64, scratch_operands = 1 : i64, tpu.core_type = #tpu.core_type<tc>, window_params = [{transform_indices = @transform_0, window_bounds = array<i64: 2, 128>}, {pipeline_mode = #tpu.pipeline_mode<synchronous>, transform_indices = @transform_1, window_bounds = array<i64: 1, 128>}, {transform_indices = @transform_2, window_bounds = array<i64: 1, 1>}]} {
    %c0_i32 = arith.constant 0 : i32
    %0 = arith.cmpi eq, %arg0, %c0_i32 : i32
    %1 = arith.extui %0 : i1 to i32
    %c0_i32_0 = arith.constant 0 : i32
    %2 = arith.cmpi ne, %1, %c0_i32_0 : i32
    scf.if %2 {
      %cst_11 = arith.constant 0.000000e+00 : f32
      %29 = vector.broadcast %cst_11 : f32 to vector<2x128xf32>
      %c0_12 = arith.constant 0 : index
      %c0_13 = arith.constant 0 : index
      %30 = vector.load %arg4[%c0_12, %c0_13] : memref<2x128xf32, #tpu.memory_space<vmem>>, vector<2x128xf32>
      tpu.vector_store %arg4[%c0_12, %c0_13], %29 {strides = array<i32>} : memref<2x128xf32, #tpu.memory_space<vmem>>, vector<2x128xf32>,
      %cst_14 = arith.constant 0.000000e+00 : f32
      %c0_15 = arith.constant 0 : index
      %c0_16 = arith.constant 0 : index
      %31 = memref.load %arg3[%c0_15, %c0_16] : memref<1x1xf32, #tpu.memory_space<smem>>
      memref.store %cst_14, %arg3[%c0_15, %c0_16] : memref<1x1xf32, #tpu.memory_space<smem>>
    } else {
    }
    %c0 = arith.constant 0 : index
    %c0_1 = arith.constant 0 : index
    %3 = vector.load %arg1[%c0, %c0_1] : memref<2x128xf32, #tpu.memory_space<vmem>>, vector<2x128xf32>
    %cst = arith.constant 9.99999974E-5 : f32
    %cst_2 = arith.constant 0.999899983 : f32
    %4 = vector.broadcast %cst : f32 to vector<2x128xf32>
    %5 = arith.maximumf %4, %3 : vector<2x128xf32>
    %6 = vector.broadcast %cst_2 : f32 to vector<2x128xf32>
    %7 = arith.minimumf %6, %5 : vector<2x128xf32>
    %cst_3 = arith.constant 1.000000e+00 : f32
    %8 = vector.broadcast %cst_3 : f32 to vector<2x128xf32>
    %9 = arith.subf %8, %7 : vector<2x128xf32>
    %10 = math.log %9 : vector<2x128xf32>
    %11 = tpu.iota {dimensions = array<i32: 0>} : vector<2x128xi32>
    %12 = tpu.iota {dimensions = array<i32: 1>} : vector<2x128xi32>
    %c2_i32 = arith.constant 2 : i32
    %13 = arith.muli %arg0, %c2_i32 : i32
    %14 = vector.broadcast %13 : i32 to vector<2x128xi32>
    %15 = arith.addi %14, %11 : vector<2x128xi32>
    %c128_i32 = arith.constant 128 : i32
    %16 = vector.broadcast %c128_i32 : i32 to vector<2x128xi32>
    %17 = arith.muli %15, %16 : vector<2x128xi32>
    %18 = arith.addi %17, %12 : vector<2x128xi32>
    %c256_i32 = arith.constant 256 : i32
    %19 = vector.broadcast %c256_i32 : i32 to vector<2x128xi32>
    %20 = arith.cmpi slt, %18, %19 : vector<2x128xi32>
    %cst_4 = arith.constant 0.000000e+00 : f32
    %21 = vector.broadcast %cst_4 : f32 to vector<2x128xf32>
    %22 = arith.select %20, %10, %21 : vector<2x128xi1>, vector<2x128xf32>
    %c0_5 = arith.constant 0 : index
    %c0_6 = arith.constant 0 : index
    %23 = vector.load %arg4[%c0_5, %c0_6] : memref<2x128xf32, #tpu.memory_space<vmem>>, vector<2x128xf32>
    %24 = arith.addf %23, %22 : vector<2x128xf32>
    %c0_7 = arith.constant 0 : index
    %c0_8 = arith.constant 0 : index
    %25 = vector.load %arg4[%c0_7, %c0_8] : memref<2x128xf32, #tpu.memory_space<vmem>>, vector<2x128xf32>
    tpu.vector_store %arg4[%c0_7, %c0_8], %24 {strides = array<i32>} : memref<2x128xf32, #tpu.memory_space<vmem>>, vector<2x128xf32>,
    %c0_i32_9 = arith.constant 0 : i32
    %26 = arith.cmpi eq, %arg0, %c0_i32_9 : i32
    %27 = arith.extui %26 : i1 to i32
    %c0_i32_10 = arith.constant 0 : i32
    %28 = arith.cmpi ne, %27, %c0_i32_10 : i32
    scf.if %28 {
      %c0_11 = arith.constant 0 : index
      %c0_12 = arith.constant 0 : index
      %29 = vector.load %arg2[%c0_11, %c0_12] : memref<1x128xf32, #tpu.memory_space<vmem>>, vector<1x128xf32>
      %cst_13 = arith.constant 9.99999974E-5 : f32
      %cst_14 = arith.constant 0.999899983 : f32
      %30 = vector.broadcast %cst_13 : f32 to vector<1x128xf32>
      %31 = arith.maximumf %30, %29 : vector<1x128xf32>
      %32 = vector.broadcast %cst_14 : f32 to vector<1x128xf32>
      %33 = arith.minimumf %32, %31 : vector<1x128xf32>
      %34 = tpu.iota {dimensions = array<i32: 0>} : vector<1x128xi32>
      %35 = tpu.iota {dimensions = array<i32: 1>} : vector<1x128xi32>
      %c128_i32_15 = arith.constant 128 : i32
      %36 = vector.broadcast %c128_i32_15 : i32 to vector<1x128xi32>
      %37 = arith.muli %34, %36 : vector<1x128xi32>
      %38 = arith.addi %37, %35 : vector<1x128xi32>
      %c32_i32 = arith.constant 32 : i32
      %39 = vector.broadcast %c32_i32 : i32 to vector<1x128xi32>
      %40 = arith.cmpi slt, %38, %39 : vector<1x128xi32>
      %41 = math.log %33 : vector<1x128xf32>
      %cst_16 = arith.constant 1.000000e+00 : f32
      %42 = vector.broadcast %cst_16 : f32 to vector<1x128xf32>
      %43 = arith.subf %42, %33 : vector<1x128xf32>
      %44 = math.log %43 : vector<1x128xf32>
      %45 = arith.subf %41, %44 : vector<1x128xf32>
      %cst_17 = arith.constant 0.000000e+00 : f32
      %46 = vector.broadcast %cst_17 : f32 to vector<1x128xf32>
      %47 = arith.select %40, %45, %46 : vector<1x128xi1>, vector<1x128xf32>
      %c0_18 = arith.constant 0 : index
      %c0_19 = arith.constant 0 : index
      %48 = vector.load %arg4[%c0_18, %c0_19] : memref<2x128xf32, #tpu.memory_space<vmem>>, vector<2x128xf32>
      %49 = vector.shape_cast %48 : vector<2x128xf32> to vector<1x2x128xf32>
      %cst_20 = arith.constant dense<0.000000e+00> : vector<1xf32>
      %50 = vector.multi_reduction <add>, %49, %cst_20 [1, 2] : vector<1x2x128xf32> to vector<1xf32>
      %51 = vector.shape_cast %50 : vector<1xf32> to vector<1x1x1xf32>
      %52 = vector.extract %51[0, 0, 0] : f32 from vector<1x1x1xf32>
      %53 = vector.shape_cast %47 : vector<1x128xf32> to vector<1x1x128xf32>
      %cst_21 = arith.constant dense<0.000000e+00> : vector<1xf32>
      %54 = vector.multi_reduction <add>, %53, %cst_21 [1, 2] : vector<1x1x128xf32> to vector<1xf32>
      %55 = vector.shape_cast %54 : vector<1xf32> to vector<1x1x1xf32>
      %56 = vector.extract %55[0, 0, 0] : f32 from vector<1x1x1xf32>
      %57 = arith.addf %52, %56 : f32
      %cst_22 = arith.constant 0.000000e+00 : f32
      %58 = arith.subf %cst_22, %57 : f32
      %c0_23 = arith.constant 0 : index
      %c0_24 = arith.constant 0 : index
      %59 = memref.load %arg3[%c0_23, %c0_24] : memref<1x1xf32, #tpu.memory_space<smem>>
      memref.store %58, %arg3[%c0_23, %c0_24] : memref<1x1xf32, #tpu.memory_space<smem>>
    } else {
    }
    return
  }
  func.func @transform_0(%arg0: i32) -> (i32, i32) {
    %c0_i32 = arith.constant 0 : i32
    %c0_i32_0 = arith.constant 0 : i32
    return %arg0, %c0_i32 : i32, i32
  }
  func.func @transform_1(%arg0: i32) -> (i32, i32) {
    %c0_i32 = arith.constant 0 : i32
    %c0_i32_0 = arith.constant 0 : i32
    %c0_i32_1 = arith.constant 0 : i32
    return %c0_i32, %c0_i32_0 : i32, i32
  }
  func.func @transform_2(%arg0: i32) -> (i32, i32) {
    %c0_i32 = arith.constant 0 : i32
    %c0_i32_0 = arith.constant 0 : i32
    %c0_i32_1 = arith.constant 0 : i32
    return %c0_i32, %c0_i32_0 : i32, i32
  }
}

</mosaic_0001>

<bundles_post_ra>
// kernel: tpu_custom_call.1
= control target key start
LH: loop header
LB: loop body
LE: loop exit
PB: predicated region body
PF: predicated region fallthrough
CT: control target
= control target key end

     0   :  { %7 = vsyncpa [#allocation4], 0  ;;  %s236_s0 = inlined_call_operand.hbm [shape: f32[2,128], index: 0, kind: input, shape index: {}]   ;;  %s237_s1 = inlined_call_operand.hbm [shape: f32[1,128], index: 1, kind: input, shape index: {}]   ;;  %s238_s2 = inlined_call_operand.hbm [shape: f32[1,1], index: 2, kind: output, shape index: {}]  }
   0x1   :  { %8 = vsyncpa [#allocation7], 0 }
   0x2   :  { %9 = vsyncpa [#allocation5], 0  ;;  %s15_s11 = sshll.u32 %s236_s0, 4  ;;  %s208_s12 = smov [#allocation3]   ;;  %s16_s11 = int_to_ptr.hbm [resolvable:$true] %s15_s11 }
   0x3   :  { %s17_s13 = sshll.u32 %s208_s12, 4  ;;  %s26_s16 = sshll.u32 %s237_s1, 4  ;;  %s18_s13 = int_to_ptr.vmem [resolvable:$true] %s17_s13  ;;  %s27_s16 = int_to_ptr.hbm [resolvable:$true] %s26_s16 }
   0x4   :  { %20 = dma.hbm_to_vmem [thread:$0]  %s16_s11, 32, %s18_s13, [#allocation4]  }
   0x5   :  { %s209_s17 = smov [#allocation6]  }
   0x6   :  { %s28_s18 = sshll.u32 %s209_s17, 4  ;;  %s29_s18 = int_to_ptr.vmem [resolvable:$true] %s28_s18 }
   0x7   :  { %31 = dma.hbm_to_vmem [thread:$0]  %s27_s16, 16, %s29_s18, [#allocation7]  }
   0x8   :  { %202 = dma.done.wait [#allocation4], 32  }
   0x9   :  { %203 = vsyncadd [#allocation4], 4294967264 }
   0xa   :  { %204 = dma.done.wait [#allocation7], 16  }
   0xb   :  { %205 = vsyncadd [#allocation7], 4294967280  ;;  %v210_v0 = vmov 0.0   ;;  %v53_v1 = vlaneseq  ;;  %v47_v2 = vld [vmem:[#allocation3] sm:$0x3]  ;;  %vm84_vm1 = vcmask 1041408  }
   0xc   :  { %44 = vst [vmem:[#allocation2] sm:$0x3] %v210_v0  ;;  %v70_v3 = vld [vmem:[#allocation6] sm:$0x1]  ;;  %v48_v4 = vmax.f32 %v47_v2, 0.0001 }
   0xd   :  { %v54_v5 = vshrl.u32 %v53_v1, 7  ;;  %v71_v6 = vmax.f32 %v70_v3, 0.0001  ;;  %v56_v9 = vand.u32 127, %v53_v1  ;;  %vm95_vm3 = vcmask 1040384   ;;  %s115_s20 = sshll.u32 %s238_s2, 4  ;;  %s116_s20 = int_to_ptr.hbm [resolvable:$true] %s115_s20 }
   0xe   :  { %v49_v7 = vmin.f32 %v48_v4, 0.9999  ;;  %s211_s24 = smov [#allocation8]  }
   0xf   :  { %v60_v10 = vmul.u32 128, %v54_v5  ;;  %v72_v11 = vmin.f32 %v71_v6, 0.9999 }
  0x10   :  { %v50_v8 = vsub.f32 1.0, %v49_v7 }
  0x11   :  { %v61_v12 = vadd.s32 %v60_v10, %v56_v9  ;;  %v78_v13 = vsub.f32 1.0, %v72_v11 }
  0x12   :  { %136 = vlog2.f32 %v50_v8 }
  0x13   :  { %138 = vlog2.f32 %v72_v11  ;;  %vm62_vm0 = vcmp.lt.s32.totalorder %v61_v12, 256  ;;  %v64_v16 = vld [vmem:[#allocation2] sm:$0x3]  ;;  %vm75_vm2 = vcmp.lt.s32.totalorder %v61_v12, 32 }
  0x14   :  { %140 = vlog2.f32 %v78_v13 }
  0x18   :  { %v137_v14 = vpop.eup %136 }
  0x19   :  { %v52_v15 = vmul.f32 0.6931472, %v137_v14  ;;  %v139_v19 = vpop.eup %138 }
  0x1a   :  { %v141_v20 = vpop.eup %140  ;;  %v77_v21 = vmul.f32 0.6931472, %v139_v19 }
  0x1b   :  { %v63_v17 = vsel %vm62_vm0, %v52_v15, 0.0  ;;  %v80_v22 = vmul.f32 0.6931472, %v141_v20 }
  0x1c   :  { %v65_v18 = vadd.f32 %v64_v16, %v63_v17 }
  0x1d   :  { %v81_v24 = vsub.f32 %v77_v21, %v80_v22 }
  0x1e   :  { %66 = vst [vmem:[#allocation2] sm:$0x3] %v65_v18 }
  0x1f   :  { %v82_v26 = vsel %vm75_vm2, %v81_v24, 0.0 }
  0x20   :  { %v96_v27 = vsel %vm95_vm3, %v82_v26, 0.0 }
  0x25   :  { %v83_v23 = vld [vmem:[#allocation2] sm:$0x3] }
  0x26   :  { %v85_v25 = vsel %vm84_vm1, %v83_v23, 0.0 }
  0x27   :  { %86 = vadd.xlane.f32.xlu0 %v85_v25 }
  0x2f   :  { %97 = vadd.xlane.f32.xlu0 %v96_v27 }
  0x9a   :  { %v87_v28 = vpop.xlane.xlu0 %86 }
  0x9b   :  { %v88_v29 = vrot.slane %v87_v28, 4 }
  0x9d   :  { %v89_v30 = vadd.f32 %v88_v29, %v87_v28 }
  0x9f   :  { %v90_v31 = vrot.slane %v89_v30, 2 }
  0xa1   :  { %v91_v32 = vadd.f32 %v90_v31, %v89_v30 }
  0xa2   :  { %v98_v33 = vpop.xlane.xlu0 %97 }
  0xa3   :  { %v99_v34 = vrot.slane %v98_v33, 4  ;;  %v92_v35 = vrot.slane %v91_v32, 1 }
  0xa5   :  { %v100_v36 = vadd.f32 %v99_v34, %v98_v33  ;;  %v93_v37 = vadd.f32 %v92_v35, %v91_v32 }
  0xa7   :  { %v101_v38 = vrot.slane %v100_v36, 2  ;;  %127 = vpush %v93_v37 }
  0xa9   :  { %v102_v39 = vadd.f32 %v101_v38, %v100_v36 }
  0xab   :  { %v103_v40 = vrot.slane %v102_v39, 1 }
  0xad   :  { %v104_v41 = vadd.f32 %v103_v40, %v102_v39 }
  0xaf   :  { %129 = vpush %v104_v41 }
  0xd8   :  { %s128_s0 = spop %127 }
  0xe0   :  { %s130_s21 = spop %129 }
  0xe1   :  { %s106_s22 = sadd.f32 %s130_s21, %s128_s0 }
  0xe3   :  { %s107_s23 = ssub.f32 0.0, %s106_s22 }
  0xe5   :  { %109 = sst [smem:[#allocation8]] %s107_s23 }
  0xe6   :  { %118 = dma.smem_to_hbm %s211_s24, 16, %s116_s20, [#allocation5]  }
  0xe7   :  { %206 = dma.done.wait [#allocation5], 16  }
  0xe8   :  { %207 = vsyncadd [#allocation5], 4294967280 }
  0xe9   :  { %123 = sfence }
  0xea   :  { %124 = vsyncpa [#allocation4], 1 }
  0xeb   :  { %125 = vsyncpa [#allocation7], 1 }
  0xec   :  { %126 = vsyncpa [#allocation5], 1 }

</bundles_post_ra>
